<compile_context>
chip_gen: v7x
topology: tpu7x:2x2x1
jax: 0.10.0
libtpu: 0.0.40
codegen_flags: <defaults>
</compile_context>

<pallas_src>
import functools

import jax
import jax.numpy as jnp
from jax.experimental import pallas as pl
from jax.experimental.pallas import tpu as pltpu  # noqa: F401  (TPU backend)

PAD_IDX = 0
NEG_INF = -1e30

# ---- model sizes (small, consistent with the module) ----
BATCH = 2
VOCAB = 64
EMB = 16
HID = 32
N_LAYERS = 2

SUBLANE = 8
LANE = 128


def _full_spec(shape):
    # whole-array block (no grid); block == full array so no (8,128) constraint
    return pl.BlockSpec(shape, lambda: tuple(0 for _ in shape))


def _pad_up(n, m):
    return ((n + m - 1) // m) * m


# ---------------------------------------------------------------------------
# Generator module: fused projection + (log_)softmax over the vocab axis.
# Weights arrive pre-transposed and lane-padded (H, V_pad) / (1, V_pad).
# ---------------------------------------------------------------------------
def _generator_kernel(x_ref, w_t_ref, b_ref, out_ref, *, log_probs):
    logits = (jnp.dot(x_ref[...], w_t_ref[...], preferred_element_type=jnp.float32)
              + b_ref[...])                                  # (B_pad, V_pad)
    m = jnp.max(logits, axis=-1, keepdims=True)
    s = logits - m
    e = jnp.exp(s)
    se = jnp.sum(e, axis=-1, keepdims=True)
    if log_probs:
        out = s - jnp.log(se)
    else:
        out = e * pl.reciprocal(se, approx=True)             # EUP vrcp, ~free
    out_ref[...] = out.astype(out_ref.dtype)


def generator_forward(x, w_proj_t_pad, b_proj_pad, vocab_size, log_probs=True):
    """Generator.forward: x (B, H) -> (B, V) (log-)softmax distribution."""
    B, H = x.shape
    V_pad = w_proj_t_pad.shape[1]
    B_pad = _pad_up(max(B, SUBLANE), SUBLANE)
    x_pad = jnp.zeros((B_pad, H), jnp.float32).at[:B].set(x)
    out = pl.pallas_call(
        functools.partial(_generator_kernel, log_probs=log_probs),
        out_shape=jax.ShapeDtypeStruct((B_pad, V_pad), jnp.float32),
        in_specs=[_full_spec((B_pad, H)), _full_spec((H, V_pad)),
                  _full_spec((1, V_pad))],
        out_specs=_full_spec((B_pad, V_pad)),
    )(x_pad, w_proj_t_pad, b_proj_pad)
    return out[:B, :vocab_size]


# ---------------------------------------------------------------------------
# Fused single-step decoder kernel:
#   embedding (one-hot @ emb) -> LSTM layer 0 -> LSTM layer 1 -> generator.
# Outputs:
#   distr_ref : (B_pad, V_pad)                lane-dense (log-)softmax
#   state_ref : (B_pad, 2*n_layers*H)         [h_0..h_{L-1} | c_0..c_{L-1}]
# ---------------------------------------------------------------------------
def _fused_decoder_step_kernel(*refs, n_layers, log_probs):
    ids_ref, emb_ref = refs[0], refs[1]
    layer_refs = [refs[2 + 3 * l: 2 + 3 * l + 3] for l in range(n_layers)]
    base = 2 + 3 * n_layers
    wproj_ref, bproj_ref, h_ref, c_ref = refs[base: base + 4]
    distr_ref, state_ref = refs[base + 4], refs[base + 5]

    # Embedding lookup fused as a one-hot matmul on the (otherwise idle) MXU.
    ids = ids_ref[...]                                       # (B_pad, 1) int32
    n_vocab = emb_ref.shape[0]
    iota = jax.lax.broadcasted_iota(jnp.int32, (ids.shape[0], n_vocab), 1)
    one_hot = (iota == ids).astype(jnp.float32)              # (B_pad, V)
    x = jnp.dot(one_hot, emb_ref[...], preferred_element_type=jnp.float32)
    # TODO(synk): embedding & inter-layer dropout are stochastic at train time;
    # identity in eval/inference mode, which is what this step reproduces.

    hs, cs = [], []
    for l in range(n_layers):
        wih_ref, whh_ref, b_ref = layer_refs[l]
        h = h_ref[l]                                         # (B_pad, H)
        c = c_ref[l]

        def gate(g):
            return (jnp.dot(x, wih_ref[g], preferred_element_type=jnp.float32)
                    + jnp.dot(h, whh_ref[g], preferred_element_type=jnp.float32)
                    + b_ref[g])                              # (B_pad, H)

        i = jax.nn.sigmoid(gate(0))
        f = jax.nn.sigmoid(gate(1))
        g = jnp.tanh(gate(2))
        o = jax.nn.sigmoid(gate(3))
        c_new = f * c + i * g
        h_new = o * jnp.tanh(c_new)
        hs.append(h_new)
        cs.append(c_new)
        x = h_new

    # Generator: projection + (log_)softmax over lane-padded vocab.
    logits = (jnp.dot(x, wproj_ref[...], preferred_element_type=jnp.float32)
              + bproj_ref[...])                              # pad lanes = -1e30
    m = jnp.max(logits, axis=-1, keepdims=True)
    s = logits - m
    e = jnp.exp(s)
    se = jnp.sum(e, axis=-1, keepdims=True)
    if log_probs:
        distr = s - jnp.log(se)
    else:
        distr = e * pl.reciprocal(se, approx=True)
    distr_ref[...] = distr.astype(distr_ref.dtype)

    # Pack all h / c into one lane-dense (B_pad, 2*n_layers*H) slab.
    state_ref[...] = jnp.concatenate(hs + cs, axis=-1).astype(state_ref.dtype)


# ---------------------------------------------------------------------------
# Parameter construction and one-time preparation.
# ---------------------------------------------------------------------------
def init_params(key):
    ks = jax.random.split(key, 4 + 4 * N_LAYERS)
    scale = 0.1
    params = {}
    emb = scale * jax.random.normal(ks[0], (VOCAB, EMB), jnp.float32)
    params["emb"] = emb.at[PAD_IDX].set(0.0)                 # padding_idx row
    params["lstm"] = []
    for l in range(N_LAYERS):
        in_size = EMB if l == 0 else HID
        k0, k1, k2, k3 = ks[4 + 4 * l: 8 + 4 * l]
        params["lstm"].append(dict(
            w_ih=scale * jax.random.normal(k0, (4 * HID, in_size), jnp.float32),
            w_hh=scale * jax.random.normal(k1, (4 * HID, HID), jnp.float32),
            b_ih=scale * jax.random.normal(k2, (4 * HID,), jnp.float32),
            b_hh=scale * jax.random.normal(k3, (4 * HID,), jnp.float32),
        ))
    params["w_proj"] = scale * jax.random.normal(ks[1], (VOCAB, HID), jnp.float32)
    params["b_proj"] = scale * jax.random.normal(ks[2], (VOCAB,), jnp.float32)
    return params


def prepare_params(params):
    """One-time weight prep: pre-transpose, split per gate (i,f,g,o), fuse the
    two LSTM biases, and pad generator weights to a lane-dense (., 128) layout."""
    hid = HID
    layers = []
    for p in params["lstm"]:
        in_size = p["w_ih"].shape[1]
        wih_t = jnp.transpose(p["w_ih"].reshape(4, hid, in_size), (0, 2, 1))  # (4,in,H)
        whh_t = jnp.transpose(p["w_hh"].reshape(4, hid, hid), (0, 2, 1))      # (4,H,H)
        b = (p["b_ih"] + p["b_hh"]).reshape(4, 1, hid)                        # (4,1,H)
        layers.append(dict(wih_t=wih_t, whh_t=whh_t, b=b))
    V = params["w_proj"].shape[0]
    V_pad = _pad_up(V, LANE)
    w_proj_t = jnp.transpose(params["w_proj"])                                # (H,V)
    w_proj_t_pad = jnp.zeros((hid, V_pad), jnp.float32).at[:, :V].set(w_proj_t)
    b_proj_pad = jnp.full((1, V_pad), NEG_INF, jnp.float32).at[0, :V].set(params["b_proj"])
    return dict(emb=params["emb"], layers=layers,
                w_proj_t_pad=w_proj_t_pad, b_proj_pad=b_proj_pad,
                vocab=V, hid=hid, n_layers=N_LAYERS)


# ---------------------------------------------------------------------------
# SeqDecoder single-step forward (eval mode: dropout = identity, no attention)
# ---------------------------------------------------------------------------
def seq_decoder_forward(prep, enc_outs, prev_out, last_hidden,
                        gen_probs=True, log_probs=True):
    n_layers, hid, vocab = prep["n_layers"], prep["hid"], prep["vocab"]
    B = prev_out.shape[0]
    if enc_outs is not None:
        assert enc_outs.shape[0] == B
    B_pad = _pad_up(max(B, SUBLANE), SUBLANE)
    V_pad = prep["w_proj_t_pad"].shape[1]

    ids = jnp.full((B_pad, 1), PAD_IDX, jnp.int32).at[:B, 0].set(prev_out.astype(jnp.int32))
    h_prev, c_prev = last_hidden                             # (n_layers, B, H)
    h_pad = jnp.zeros((n_layers, B_pad, hid), jnp.float32).at[:, :B].set(h_prev)
    c_pad = jnp.zeros((n_layers, B_pad, hid), jnp.float32).at[:, :B].set(c_prev)

    layer_args = []
    in_specs = [_full_spec(ids.shape), _full_spec(prep["emb"].shape)]
    for lp in prep["layers"]:
        layer_args += [lp["wih_t"], lp["whh_t"], lp["b"]]
        in_specs += [_full_spec(lp["wih_t"].shape), _full_spec(lp["whh_t"].shape),
                     _full_spec(lp["b"].shape)]
    tail_args = [prep["w_proj_t_pad"], prep["b_proj_pad"], h_pad, c_pad]
    in_specs += [_full_spec(a.shape) for a in tail_args]

    distr_pad, state = pl.pallas_call(
        functools.partial(_fused_decoder_step_kernel,
                          n_layers=n_layers, log_probs=log_probs),
        out_shape=(jax.ShapeDtypeStruct((B_pad, V_pad), jnp.float32),
                   jax.ShapeDtypeStruct((B_pad, 2 * n_layers * hid), jnp.float32)),
        in_specs=in_specs,
        out_specs=(_full_spec((B_pad, V_pad)),
                   _full_spec((B_pad, 2 * n_layers * hid))),
    )(ids, prep["emb"], *layer_args, *tail_args)

    slab = state[:B].reshape(B, 2 * n_layers, hid)           # [h_0..h_L-1|c_0..c_L-1]
    h_new = jnp.transpose(slab[:, :n_layers], (1, 0, 2))
    c_new = jnp.transpose(slab[:, n_layers:], (1, 0, 2))
    hidden = (h_new, c_new)

    if gen_probs:
        return distr_pad[:B, :vocab], hidden, None
    rnn_output = slab[:, n_layers - 1]                       # last layer's h (B, H)
    return rnn_output, hidden, None


# ---------------------------------------------------------------------------
# Pure-JAX references (correctness checks)
# ---------------------------------------------------------------------------
def _ref_forward(params, prev_out, last_hidden):
    x = jnp.take(params["emb"], prev_out, axis=0)
    h_prev, c_prev = last_hidden
    hs, cs = [], []
    for l in range(N_LAYERS):
        p = params["lstm"][l]
        gates = x @ p["w_ih"].T + h_prev[l] @ p["w_hh"].T + p["b_ih"] + p["b_hh"]
        i, f, g, o = jnp.split(gates, 4, axis=-1)
        i, f, o = jax.nn.sigmoid(i), jax.nn.sigmoid(f), jax.nn.sigmoid(o)
        g = jnp.tanh(g)
        c_new = f * c_prev[l] + i * g
        h_new = o * jnp.tanh(c_new)
        hs.append(h_new); cs.append(c_new)
        x = h_new
    logits = x @ params["w_proj"].T + params["b_proj"]
    return jax.nn.log_softmax(logits, axis=-1), (jnp.stack(hs), jnp.stack(cs))


if __name__ == "__main__":
    key = jax.random.PRNGKey(0)
    kp, ki, kh, kc, kx = jax.random.split(key, 5)

    raw = init_params(kp)
    prep = prepare_params(raw)        # one-time weight prep, not per step

    prev_out = jax.random.randint(ki, (BATCH,), 1, VOCAB, dtype=jnp.int32)
    h0 = 0.1 * jax.random.normal(kh, (N_LAYERS, BATCH, HID), jnp.float32)
    c0 = 0.1 * jax.random.normal(kc, (N_LAYERS, BATCH, HID), jnp.float32)
    enc_outs = jnp.zeros((BATCH, 8, HID), jnp.float32)   # only length-checked

    # fused decoder step (embedding + 2x LSTM + generator in one pallas_call)
    distr, (h_new, c_new), attn = seq_decoder_forward(
        prep, enc_outs, prev_out, (h0, c0), gen_probs=True, log_probs=True)
    jax.block_until_ready((distr, h_new, c_new))

    ref_distr, (ref_h, ref_c) = _ref_forward(raw, prev_out, (h0, c0))
    assert jnp.allclose(distr, ref_distr, atol=1e-4), "distr mismatch"
    assert jnp.allclose(h_new, ref_h, atol=1e-4), "h mismatch"
    assert jnp.allclose(c_new, ref_c, atol=1e-4), "c mismatch"
    assert distr.shape == (BATCH, VOCAB)
    assert h_new.shape == (N_LAYERS, BATCH, HID)

    # standalone Generator module check (log-prob and prob paths)
    x = 0.1 * jax.random.normal(kx, (BATCH, HID), jnp.float32)
    gen_log = generator_forward(x, prep["w_proj_t_pad"], prep["b_proj_pad"],
                                VOCAB, log_probs=True)
    gen_prob = generator_forward(x, prep["w_proj_t_pad"], prep["b_proj_pad"],
                                 VOCAB, log_probs=False)
    jax.block_until_ready((gen_log, gen_prob))
    logits_ref = x @ raw["w_proj"].T + raw["b_proj"]
    assert jnp.allclose(gen_log, jax.nn.log_softmax(logits_ref, -1), atol=1e-4)
    # approx reciprocal path: slightly relaxed tolerance
    assert jnp.allclose(gen_prob, jax.nn.softmax(logits_ref, -1), atol=2e-3)
    assert gen_log.shape == (BATCH, VOCAB)

    print("KERNEL_OK")
</pallas_src>

<mosaic_0001>
module attributes {stable_mosaic.version = 11 : i64} {
  func.func @_fused_decoder_step_kernel(%arg0: memref<8x1xi32, #tpu.memory_space<vmem>>, %arg1: memref<64x16xf32, #tpu.memory_space<vmem>>, %arg2: memref<4x16x32xf32, #tpu.memory_space<vmem>>, %arg3: memref<4x32x32xf32, #tpu.memory_space<vmem>>, %arg4: memref<4x1x32xf32, #tpu.memory_space<vmem>>, %arg5: memref<4x32x32xf32, #tpu.memory_space<vmem>>, %arg6: memref<4x32x32xf32, #tpu.memory_space<vmem>>, %arg7: memref<4x1x32xf32, #tpu.memory_space<vmem>>, %arg8: memref<32x128xf32, #tpu.memory_space<vmem>>, %arg9: memref<1x128xf32, #tpu.memory_space<vmem>>, %arg10: memref<2x8x32xf32, #tpu.memory_space<vmem>>, %arg11: memref<2x8x32xf32, #tpu.memory_space<vmem>>, %arg12: memref<8x128xf32, #tpu.memory_space<vmem>>, %arg13: memref<8x128xf32, #tpu.memory_space<vmem>>) attributes {dimension_semantics = [], scalar_prefetch = 0 : i64, scratch_operands = 0 : i64, tpu.core_type = #tpu.core_type<tc>} {
    %c0 = arith.constant 0 : index
    %c0_0 = arith.constant 0 : index
    %0 = vector.load %arg0[%c0, %c0_0] : memref<8x1xi32, #tpu.memory_space<vmem>>, vector<8x1xi32>
    %1 = tpu.iota {dimensions = array<i32: 1>} : vector<8x64xi32>
    %2 = vector.broadcast %0 : vector<8x1xi32> to vector<8x64xi32>
    %3 = arith.cmpi eq, %1, %2 : vector<8x64xi32>
    %4 = arith.extui %3 : vector<8x64xi1> to vector<8x64xi32>
    %5 = arith.sitofp %4 : vector<8x64xi32> to vector<8x64xf32>
    %c0_1 = arith.constant 0 : index
    %c0_2 = arith.constant 0 : index
    %6 = vector.load %arg1[%c0_1, %c0_2] : memref<64x16xf32, #tpu.memory_space<vmem>>, vector<64x16xf32>
    %cst = arith.constant dense<0.000000e+00> : vector<8x16xf32>
    %7 = tpu.matmul %5, %6, %cst {dimension_numbers = #tpu.dot_dimension_numbers<[1], [0], [0], [1], [0, 0, 1, 1], [], []>} : vector<8x64xf32>, vector<64x16xf32>, vector<8x16xf32> -> vector<8x16xf32>
    %c0_3 = arith.constant 0 : index
    %c0_4 = arith.constant 0 : index
    %c0_5 = arith.constant 0 : index
    %8 = vector.load %arg10[%c0_3, %c0_4, %c0_5] : memref<2x8x32xf32, #tpu.memory_space<vmem>>, vector<1x8x32xf32>
    %9 = vector.shape_cast %8 : vector<1x8x32xf32> to vector<8x32xf32>
    %c0_6 = arith.constant 0 : index
    %c0_7 = arith.constant 0 : index
    %c0_8 = arith.constant 0 : index
    %10 = vector.load %arg11[%c0_6, %c0_7, %c0_8] : memref<2x8x32xf32, #tpu.memory_space<vmem>>, vector<1x8x32xf32>
    %11 = vector.shape_cast %10 : vector<1x8x32xf32> to vector<8x32xf32>
    %c0_9 = arith.constant 0 : index
    %c0_10 = arith.constant 0 : index
    %c0_11 = arith.constant 0 : index
    %12 = vector.load %arg2[%c0_9, %c0_10, %c0_11] : memref<4x16x32xf32, #tpu.memory_space<vmem>>, vector<1x16x32xf32>
    %13 = vector.shape_cast %12 : vector<1x16x32xf32> to vector<16x32xf32>
    %cst_12 = arith.constant dense<0.000000e+00> : vector<8x32xf32>
    %14 = tpu.matmul %7, %13, %cst_12 {dimension_numbers = #tpu.dot_dimension_numbers<[1], [0], [0], [1], [0, 0, 1, 1], [], []>} : vector<8x16xf32>, vector<16x32xf32>, vector<8x32xf32> -> vector<8x32xf32>
    %c0_13 = arith.constant 0 : index
    %c0_14 = arith.constant 0 : index
    %c0_15 = arith.constant 0 : index
    %15 = vector.load %arg3[%c0_13, %c0_14, %c0_15] : memref<4x32x32xf32, #tpu.memory_space<vmem>>, vector<1x32x32xf32>
    %16 = vector.shape_cast %15 : vector<1x32x32xf32> to vector<32x32xf32>
    %cst_16 = arith.constant dense<0.000000e+00> : vector<8x32xf32>
    %17 = tpu.matmul %9, %16, %cst_16 {dimension_numbers = #tpu.dot_dimension_numbers<[1], [0], [0], [1], [0, 0, 1, 1], [], []>} : vector<8x32xf32>, vector<32x32xf32>, vector<8x32xf32> -> vector<8x32xf32>
    %18 = arith.addf %14, %17 : vector<8x32xf32>
    %c0_17 = arith.constant 0 : index
    %c0_18 = arith.constant 0 : index
    %c0_19 = arith.constant 0 : index
    %19 = vector.load %arg4[%c0_17, %c0_18, %c0_19] : memref<4x1x32xf32, #tpu.memory_space<vmem>>, vector<1x1x32xf32>
    %20 = vector.shape_cast %19 : vector<1x1x32xf32> to vector<1x32xf32>
    %21 = vector.broadcast %20 : vector<1x32xf32> to vector<8x32xf32>
    %22 = arith.addf %18, %21 : vector<8x32xf32>
    %23 = arith.negf %22 : vector<8x32xf32>
    %24 = math.exp %23 : vector<8x32xf32>
    %cst_20 = arith.constant 1.000000e+00 : f32
    %25 = vector.broadcast %cst_20 : f32 to vector<8x32xf32>
    %26 = arith.addf %25, %24 : vector<8x32xf32>
    %27 = arith.divf %25, %26 : vector<8x32xf32>
    %c1 = arith.constant 1 : index
    %c0_21 = arith.constant 0 : index
    %c0_22 = arith.constant 0 : index
    %28 = vector.load %arg2[%c1, %c0_21, %c0_22] : memref<4x16x32xf32, #tpu.memory_space<vmem>>, vector<1x16x32xf32>
    %29 = vector.shape_cast %28 : vector<1x16x32xf32> to vector<16x32xf32>
    %cst_23 = arith.constant dense<0.000000e+00> : vector<8x32xf32>
    %30 = tpu.matmul %7, %29, %cst_23 {dimension_numbers = #tpu.dot_dimension_numbers<[1], [0], [0], [1], [0, 0, 1, 1], [], []>} : vector<8x16xf32>, vector<16x32xf32>, vector<8x32xf32> -> vector<8x32xf32>
    %c1_24 = arith.constant 1 : index
    %c0_25 = arith.constant 0 : index
    %c0_26 = arith.constant 0 : index
    %31 = vector.load %arg3[%c1_24, %c0_25, %c0_26] : memref<4x32x32xf32, #tpu.memory_space<vmem>>, vector<1x32x32xf32>
    %32 = vector.shape_cast %31 : vector<1x32x32xf32> to vector<32x32xf32>
    %cst_27 = arith.constant dense<0.000000e+00> : vector<8x32xf32>
    %33 = tpu.matmul %9, %32, %cst_27 {dimension_numbers = #tpu.dot_dimension_numbers<[1], [0], [0], [1], [0, 0, 1, 1], [], []>} : vector<8x32xf32>, vector<32x32xf32>, vector<8x32xf32> -> vector<8x32xf32>
    %34 = arith.addf %30, %33 : vector<8x32xf32>
    %c1_28 = arith.constant 1 : index
    %c0_29 = arith.constant 0 : index
    %c0_30 = arith.constant 0 : index
    %35 = vector.load %arg4[%c1_28, %c0_29, %c0_30] : memref<4x1x32xf32, #tpu.memory_space<vmem>>, vector<1x1x32xf32>
    %36 = vector.shape_cast %35 : vector<1x1x32xf32> to vector<1x32xf32>
    %37 = vector.broadcast %36 : vector<1x32xf32> to vector<8x32xf32>
    %38 = arith.addf %34, %37 : vector<8x32xf32>
    %39 = arith.negf %38 : vector<8x32xf32>
    %40 = math.exp %39 : vector<8x32xf32>
    %cst_31 = arith.constant 1.000000e+00 : f32
    %41 = vector.broadcast %cst_31 : f32 to vector<8x32xf32>
    %42 = arith.addf %41, %40 : vector<8x32xf32>
    %43 = arith.divf %41, %42 : vector<8x32xf32>
    %c2 = arith.constant 2 : index
    %c0_32 = arith.constant 0 : index
    %c0_33 = arith.constant 0 : index
    %44 = vector.load %arg2[%c2, %c0_32, %c0_33] : memref<4x16x32xf32, #tpu.memory_space<vmem>>, vector<1x16x32xf32>
    %45 = vector.shape_cast %44 : vector<1x16x32xf32> to vector<16x32xf32>
    %cst_34 = arith.constant dense<0.000000e+00> : vector<8x32xf32>
    %46 = tpu.matmul %7, %45, %cst_34 {dimension_numbers = #tpu.dot_dimension_numbers<[1], [0], [0], [1], [0, 0, 1, 1], [], []>} : vector<8x16xf32>, vector<16x32xf32>, vector<8x32xf32> -> vector<8x32xf32>
    %c2_35 = arith.constant 2 : index
    %c0_36 = arith.constant 0 : index
    %c0_37 = arith.constant 0 : index
    %47 = vector.load %arg3[%c2_35, %c0_36, %c0_37] : memref<4x32x32xf32, #tpu.memory_space<vmem>>, vector<1x32x32xf32>
    %48 = vector.shape_cast %47 : vector<1x32x32xf32> to vector<32x32xf32>
    %cst_38 = arith.constant dense<0.000000e+00> : vector<8x32xf32>
    %49 = tpu.matmul %9, %48, %cst_38 {dimension_numbers = #tpu.dot_dimension_numbers<[1], [0], [0], [1], [0, 0, 1, 1], [], []>} : vector<8x32xf32>, vector<32x32xf32>, vector<8x32xf32> -> vector<8x32xf32>
    %50 = arith.addf %46, %49 : vector<8x32xf32>
    %c2_39 = arith.constant 2 : index
    %c0_40 = arith.constant 0 : index
    %c0_41 = arith.constant 0 : index
    %51 = vector.load %arg4[%c2_39, %c0_40, %c0_41] : memref<4x1x32xf32, #tpu.memory_space<vmem>>, vector<1x1x32xf32>
    %52 = vector.shape_cast %51 : vector<1x1x32xf32> to vector<1x32xf32>
    %53 = vector.broadcast %52 : vector<1x32xf32> to vector<8x32xf32>
    %54 = arith.addf %50, %53 : vector<8x32xf32>
    %55 = math.tanh %54 : vector<8x32xf32>
    %c3 = arith.constant 3 : index
    %c0_42 = arith.constant 0 : index
    %c0_43 = arith.constant 0 : index
    %56 = vector.load %arg2[%c3, %c0_42, %c0_43] : memref<4x16x32xf32, #tpu.memory_space<vmem>>, vector<1x16x32xf32>
    %57 = vector.shape_cast %56 : vector<1x16x32xf32> to vector<16x32xf32>
    %cst_44 = arith.constant dense<0.000000e+00> : vector<8x32xf32>
    %58 = tpu.matmul %7, %57, %cst_44 {dimension_numbers = #tpu.dot_dimension_numbers<[1], [0], [0], [1], [0, 0, 1, 1], [], []>} : vector<8x16xf32>, vector<16x32xf32>, vector<8x32xf32> -> vector<8x32xf32>
    %c3_45 = arith.constant 3 : index
    %c0_46 = arith.constant 0 : index
    %c0_47 = arith.constant 0 : index
    %59 = vector.load %arg3[%c3_45, %c0_46, %c0_47] : memref<4x32x32xf32, #tpu.memory_space<vmem>>, vector<1x32x32xf32>
    %60 = vector.shape_cast %59 : vector<1x32x32xf32> to vector<32x32xf32>
    %cst_48 = arith.constant dense<0.000000e+00> : vector<8x32xf32>
    %61 = tpu.matmul %9, %60, %cst_48 {dimension_numbers = #tpu.dot_dimension_numbers<[1], [0], [0], [1], [0, 0, 1, 1], [], []>} : vector<8x32xf32>, vector<32x32xf32>, vector<8x32xf32> -> vector<8x32xf32>
    %62 = arith.addf %58, %61 : vector<8x32xf32>
    %c3_49 = arith.constant 3 : index
    %c0_50 = arith.constant 0 : index
    %c0_51 = arith.constant 0 : index
    %63 = vector.load %arg4[%c3_49, %c0_50, %c0_51] : memref<4x1x32xf32, #tpu.memory_space<vmem>>, vector<1x1x32xf32>
    %64 = vector.shape_cast %63 : vector<1x1x32xf32> to vector<1x32xf32>
    %65 = vector.broadcast %64 : vector<1x32xf32> to vector<8x32xf32>
    %66 = arith.addf %62, %65 : vector<8x32xf32>
    %67 = arith.negf %66 : vector<8x32xf32>
    %68 = math.exp %67 : vector<8x32xf32>
    %cst_52 = arith.constant 1.000000e+00 : f32
    %69 = vector.broadcast %cst_52 : f32 to vector<8x32xf32>
    %70 = arith.addf %69, %68 : vector<8x32xf32>
    %71 = arith.divf %69, %70 : vector<8x32xf32>
    %72 = arith.mulf %43, %11 : vector<8x32xf32>
    %73 = arith.mulf %27, %55 : vector<8x32xf32>
    %74 = arith.addf %72, %73 : vector<8x32xf32>
    %75 = math.tanh %74 : vector<8x32xf32>
    %76 = arith.mulf %71, %75 : vector<8x32xf32>
    %c1_53 = arith.constant 1 : index
    %c0_54 = arith.constant 0 : index
    %c0_55 = arith.constant 0 : index
    %77 = vector.load %arg10[%c1_53, %c0_54, %c0_55] : memref<2x8x32xf32, #tpu.memory_space<vmem>>, vector<1x8x32xf32>
    %78 = vector.shape_cast %77 : vector<1x8x32xf32> to vector<8x32xf32>
    %c1_56 = arith.constant 1 : index
    %c0_57 = arith.constant 0 : index
    %c0_58 = arith.constant 0 : index
    %79 = vector.load %arg11[%c1_56, %c0_57, %c0_58] : memref<2x8x32xf32, #tpu.memory_space<vmem>>, vector<1x8x32xf32>
    %80 = vector.shape_cast %79 : vector<1x8x32xf32> to vector<8x32xf32>
    %c0_59 = arith.constant 0 : index
    %c0_60 = arith.constant 0 : index
    %c0_61 = arith.constant 0 : index
    %81 = vector.load %arg5[%c0_59, %c0_60, %c0_61] : memref<4x32x32xf32, #tpu.memory_space<vmem>>, vector<1x32x32xf32>
    %82 = vector.shape_cast %81 : vector<1x32x32xf32> to vector<32x32xf32>
    %cst_62 = arith.constant dense<0.000000e+00> : vector<8x32xf32>
    %83 = tpu.matmul %76, %82, %cst_62 {dimension_numbers = #tpu.dot_dimension_numbers<[1], [0], [0], [1], [0, 0, 1, 1], [], []>} : vector<8x32xf32>, vector<32x32xf32>, vector<8x32xf32> -> vector<8x32xf32>
    %c0_63 = arith.constant 0 : index
    %c0_64 = arith.constant 0 : index
    %c0_65 = arith.constant 0 : index
    %84 = vector.load %arg6[%c0_63, %c0_64, %c0_65] : memref<4x32x32xf32, #tpu.memory_space<vmem>>, vector<1x32x32xf32>
    %85 = vector.shape_cast %84 : vector<1x32x32xf32> to vector<32x32xf32>
    %cst_66 = arith.constant dense<0.000000e+00> : vector<8x32xf32>
    %86 = tpu.matmul %78, %85, %cst_66 {dimension_numbers = #tpu.dot_dimension_numbers<[1], [0], [0], [1], [0, 0, 1, 1], [], []>} : vector<8x32xf32>, vector<32x32xf32>, vector<8x32xf32> -> vector<8x32xf32>
    %87 = arith.addf %83, %86 : vector<8x32xf32>
    %c0_67 = arith.constant 0 : index
    %c0_68 = arith.constant 0 : index
    %c0_69 = arith.constant 0 : index
    %88 = vector.load %arg7[%c0_67, %c0_68, %c0_69] : memref<4x1x32xf32, #tpu.memory_space<vmem>>, vector<1x1x32xf32>
    %89 = vector.shape_cast %88 : vector<1x1x32xf32> to vector<1x32xf32>
    %90 = vector.broadcast %89 : vector<1x32xf32> to vector<8x32xf32>
    %91 = arith.addf %87, %90 : vector<8x32xf32>
    %92 = arith.negf %91 : vector<8x32xf32>
    %93 = math.exp %92 : vector<8x32xf32>
    %cst_70 = arith.constant 1.000000e+00 : f32
    %94 = vector.broadcast %cst_70 : f32 to vector<8x32xf32>
    %95 = arith.addf %94, %93 : vector<8x32xf32>
    %96 = arith.divf %94, %95 : vector<8x32xf32>
    %c1_71 = arith.constant 1 : index
    %c0_72 = arith.constant 0 : index
    %c0_73 = arith.constant 0 : index
    %97 = vector.load %arg5[%c1_71, %c0_72, %c0_73] : memref<4x32x32xf32, #tpu.memory_space<vmem>>, vector<1x32x32xf32>
    %98 = vector.shape_cast %97 : vector<1x32x32xf32> to vector<32x32xf32>
    %cst_74 = arith.constant dense<0.000000e+00> : vector<8x32xf32>
    %99 = tpu.matmul %76, %98, %cst_74 {dimension_numbers = #tpu.dot_dimension_numbers<[1], [0], [0], [1], [0, 0, 1, 1], [], []>} : vector<8x32xf32>, vector<32x32xf32>, vector<8x32xf32> -> vector<8x32xf32>
    %c1_75 = arith.constant 1 : index
    %c0_76 = arith.constant 0 : index
    %c0_77 = arith.constant 0 : index
    %100 = vector.load %arg6[%c1_75, %c0_76, %c0_77] : memref<4x32x32xf32, #tpu.memory_space<vmem>>, vector<1x32x32xf32>
    %101 = vector.shape_cast %100 : vector<1x32x32xf32> to vector<32x32xf32>
    %cst_78 = arith.constant dense<0.000000e+00> : vector<8x32xf32>
    %102 = tpu.matmul %78, %101, %cst_78 {dimension_numbers = #tpu.dot_dimension_numbers<[1], [0], [0], [1], [0, 0, 1, 1], [], []>} : vector<8x32xf32>, vector<32x32xf32>, vector<8x32xf32> -> vector<8x32xf32>
    %103 = arith.addf %99, %102 : vector<8x32xf32>
    %c1_79 = arith.constant 1 : index
    %c0_80 = arith.constant 0 : index
    %c0_81 = arith.constant 0 : index
    %104 = vector.load %arg7[%c1_79, %c0_80, %c0_81] : memref<4x1x32xf32, #tpu.memory_space<vmem>>, vector<1x1x32xf32>
    %105 = vector.shape_cast %104 : vector<1x1x32xf32> to vector<1x32xf32>
    %106 = vector.broadcast %105 : vector<1x32xf32> to vector<8x32xf32>
    %107 = arith.addf %103, %106 : vector<8x32xf32>
    %108 = arith.negf %107 : vector<8x32xf32>
    %109 = math.exp %108 : vector<8x32xf32>
    %cst_82 = arith.constant 1.000000e+00 : f32
    %110 = vector.broadcast %cst_82 : f32 to vector<8x32xf32>
    %111 = arith.addf %110, %109 : vector<8x32xf32>
    %112 = arith.divf %110, %111 : vector<8x32xf32>
    %c2_83 = arith.constant 2 : index
    %c0_84 = arith.constant 0 : index
    %c0_85 = arith.constant 0 : index
    %113 = vector.load %arg5[%c2_83, %c0_84, %c0_85] : memref<4x32x32xf32, #tpu.memory_space<vmem>>, vector<1x32x32xf32>
    %114 = vector.shape_cast %113 : vector<1x32x32xf32> to vector<32x32xf32>
    %cst_86 = arith.constant dense<0.000000e+00> : vector<8x32xf32>
    %115 = tpu.matmul %76, %114, %cst_86 {dimension_numbers = #tpu.dot_dimension_numbers<[1], [0], [0], [1], [0, 0, 1, 1], [], []>} : vector<8x32xf32>, vector<32x32xf32>, vector<8x32xf32> -> vector<8x32xf32>
    %c2_87 = arith.constant 2 : index
    %c0_88 = arith.constant 0 : index
    %c0_89 = arith.constant 0 : index
    %116 = vector.load %arg6[%c2_87, %c0_88, %c0_89] : memref<4x32x32xf32, #tpu.memory_space<vmem>>, vector<1x32x32xf32>
    %117 = vector.shape_cast %116 : vector<1x32x32xf32> to vector<32x32xf32>
    %cst_90 = arith.constant dense<0.000000e+00> : vector<8x32xf32>
    %118 = tpu.matmul %78, %117, %cst_90 {dimension_numbers = #tpu.dot_dimension_numbers<[1], [0], [0], [1], [0, 0, 1, 1], [], []>} : vector<8x32xf32>, vector<32x32xf32>, vector<8x32xf32> -> vector<8x32xf32>
    %119 = arith.addf %115, %118 : vector<8x32xf32>
    %c2_91 = arith.constant 2 : index
    %c0_92 = arith.constant 0 : index
    %c0_93 = arith.constant 0 : index
    %120 = vector.load %arg7[%c2_91, %c0_92, %c0_93] : memref<4x1x32xf32, #tpu.memory_space<vmem>>, vector<1x1x32xf32>
    %121 = vector.shape_cast %120 : vector<1x1x32xf32> to vector<1x32xf32>
    %122 = vector.broadcast %121 : vector<1x32xf32> to vector<8x32xf32>
    %123 = arith.addf %119, %122 : vector<8x32xf32>
    %124 = math.tanh %123 : vector<8x32xf32>
    %c3_94 = arith.constant 3 : index
    %c0_95 = arith.constant 0 : index
    %c0_96 = arith.constant 0 : index
    %125 = vector.load %arg5[%c3_94, %c0_95, %c0_96] : memref<4x32x32xf32, #tpu.memory_space<vmem>>, vector<1x32x32xf32>
    %126 = vector.shape_cast %125 : vector<1x32x32xf32> to vector<32x32xf32>
    %cst_97 = arith.constant dense<0.000000e+00> : vector<8x32xf32>
    %127 = tpu.matmul %76, %126, %cst_97 {dimension_numbers = #tpu.dot_dimension_numbers<[1], [0], [0], [1], [0, 0, 1, 1], [], []>} : vector<8x32xf32>, vector<32x32xf32>, vector<8x32xf32> -> vector<8x32xf32>
    %c3_98 = arith.constant 3 : index
    %c0_99 = arith.constant 0 : index
    %c0_100 = arith.constant 0 : index
    %128 = vector.load %arg6[%c3_98, %c0_99, %c0_100] : memref<4x32x32xf32, #tpu.memory_space<vmem>>, vector<1x32x32xf32>
    %129 = vector.shape_cast %128 : vector<1x32x32xf32> to vector<32x32xf32>
    %cst_101 = arith.constant dense<0.000000e+00> : vector<8x32xf32>
    %130 = tpu.matmul %78, %129, %cst_101 {dimension_numbers = #tpu.dot_dimension_numbers<[1], [0], [0], [1], [0, 0, 1, 1], [], []>} : vector<8x32xf32>, vector<32x32xf32>, vector<8x32xf32> -> vector<8x32xf32>
    %131 = arith.addf %127, %130 : vector<8x32xf32>
    %c3_102 = arith.constant 3 : index
    %c0_103 = arith.constant 0 : index
    %c0_104 = arith.constant 0 : index
    %132 = vector.load %arg7[%c3_102, %c0_103, %c0_104] : memref<4x1x32xf32, #tpu.memory_space<vmem>>, vector<1x1x32xf32>
    %133 = vector.shape_cast %132 : vector<1x1x32xf32> to vector<1x32xf32>
    %134 = vector.broadcast %133 : vector<1x32xf32> to vector<8x32xf32>
    %135 = arith.addf %131, %134 : vector<8x32xf32>
    %136 = arith.negf %135 : vector<8x32xf32>
    %137 = math.exp %136 : vector<8x32xf32>
    %cst_105 = arith.constant 1.000000e+00 : f32
    %138 = vector.broadcast %cst_105 : f32 to vector<8x32xf32>
    %139 = arith.addf %138, %137 : vector<8x32xf32>
    %140 = arith.divf %138, %139 : vector<8x32xf32>
    %141 = arith.mulf %112, %80 : vector<8x32xf32>
    %142 = arith.mulf %96, %124 : vector<8x32xf32>
    %143 = arith.addf %141, %142 : vector<8x32xf32>
    %144 = math.tanh %143 : vector<8x32xf32>
    %145 = arith.mulf %140, %144 : vector<8x32xf32>
    %c0_106 = arith.constant 0 : index
    %c0_107 = arith.constant 0 : index
    %146 = vector.load %arg8[%c0_106, %c0_107] : memref<32x128xf32, #tpu.memory_space<vmem>>, vector<32x128xf32>
    %cst_108 = arith.constant dense<0.000000e+00> : vector<8x128xf32>
    %147 = tpu.matmul %145, %146, %cst_108 {dimension_numbers = #tpu.dot_dimension_numbers<[1], [0], [0], [1], [0, 0, 1, 1], [], []>} : vector<8x32xf32>, vector<32x128xf32>, vector<8x128xf32> -> vector<8x128xf32>
    %c0_109 = arith.constant 0 : index
    %c0_110 = arith.constant 0 : index
    %148 = vector.load %arg9[%c0_109, %c0_110] : memref<1x128xf32, #tpu.memory_space<vmem>>, vector<1x128xf32>
    %149 = vector.broadcast %148 : vector<1x128xf32> to vector<8x128xf32>
    %150 = arith.addf %147, %149 : vector<8x128xf32>
    %cst_111 = arith.constant dense<0xFF800000> : vector<8xf32>
    %151 = vector.multi_reduction <maximumf>, %150, %cst_111 [1] : vector<8x128xf32> to vector<8xf32>
    %152 = vector.shape_cast %151 : vector<8xf32> to vector<8x1xf32>
    %153 = vector.broadcast %152 : vector<8x1xf32> to vector<8x128xf32>
    %154 = arith.subf %150, %153 : vector<8x128xf32>
    %155 = math.exp %154 : vector<8x128xf32>
    %cst_112 = arith.constant dense<0.000000e+00> : vector<8xf32>
    %156 = vector.multi_reduction <add>, %155, %cst_112 [1] : vector<8x128xf32> to vector<8xf32>
    %157 = vector.shape_cast %156 : vector<8xf32> to vector<8x1xf32>
    %158 = math.log %157 : vector<8x1xf32>
    %159 = vector.broadcast %158 : vector<8x1xf32> to vector<8x128xf32>
    %160 = arith.subf %154, %159 : vector<8x128xf32>
    %c0_113 = arith.constant 0 : index
    %c0_114 = arith.constant 0 : index
    %161 = vector.load %arg12[%c0_113, %c0_114] : memref<8x128xf32, #tpu.memory_space<vmem>>, vector<8x128xf32>
    tpu.vector_store %arg12[%c0_113, %c0_114], %160 {strides = array<i32>} : memref<8x128xf32, #tpu.memory_space<vmem>>, vector<8x128xf32>,
    %162 = tpu.concatenate %76, %145, %74, %143 in 1 : vector<8x32xf32>, vector<8x32xf32>, vector<8x32xf32>, vector<8x32xf32> -> vector<8x128xf32>
    %c0_115 = arith.constant 0 : index
    %c0_116 = arith.constant 0 : index
    %163 = vector.load %arg13[%c0_115, %c0_116] : memref<8x128xf32, #tpu.memory_space<vmem>>, vector<8x128xf32>
    tpu.vector_store %arg13[%c0_115, %c0_116], %162 {strides = array<i32>} : memref<8x128xf32, #tpu.memory_space<vmem>>, vector<8x128xf32>,
    return
  }
}

</mosaic_0001>

<bundles_post_ra>
// kernel: tpu_custom_call.1
= control target key start
LH: loop header
LB: loop body
LE: loop exit
PB: predicated region body
PF: predicated region fallthrough
CT: control target
= control target key end

     0   :  { %19 = vsyncpa [#allocation3], 0  ;;  %s2690_s0 = inlined_call_operand.vmem [shape: s32[8,1], index: 0, kind: input, shape index: {}]   ;;  %s2691_s1 = inlined_call_operand.vmem [shape: f32[64,16], index: 1, kind: input, shape index: {}]   ;;  %s2692_s2 = inlined_call_operand.vmem [shape: f32[4,16,32], index: 2, kind: input, shape index: {}]   ;;  %s2693_s3 = inlined_call_operand.hbm [shape: f32[4,32,32], index: 3, kind: input, shape index: {}]   ;;  %s2694_s4 = inlined_call_operand.hbm [shape: f32[4,1,32], index: 4, kind: input, shape index: {}]   ;;  %s2695_s5 = inlined_call_operand.hbm [shape: f32[4,32,32], index: 5, kind: input, shape index: {}]   ;;  %s2696_s6 = inlined_call_operand.hbm [shape: f32[4,32,32], index: 6, kind: input, shape index: {}]   ;;  %s2697_s7 = inlined_call_operand.hbm [shape: f32[4,1,32], index: 7, kind: input, shape index: {}]   ;;  %s2698_s8 = inlined_call_operand.vmem [shape: f32[32,128], index: 8, kind: input, shape index: {}]   ;;  %s2699_s9 = inlined_call_operand.vmem [shape: f32[1,128], index: 9, kind: input, shape index: {}]   ;;  %s2700_s10 = inlined_call_operand.vmem [shape: f32[2,8,32], index: 10, kind: input, shape index: {}]   ;;  %s2701_s11 = inlined_call_operand.vmem [shape: f32[2,8,32], index: 11, kind: input, shape index: {}]   ;;  %s2702_s12 = inlined_call_operand.hbm [shape: f32[8,128], index: 12, kind: output, shape index: {0}]   ;;  %s2703_s13 = inlined_call_operand.hbm [shape: f32[8,128], index: 13, kind: output, shape index: {1}]  }
   0x1   :  { %20 = vsyncpa [#allocation6], 0 }
   0x2   :  { %21 = vsyncpa [#allocation9], 0 }
   0x3   :  { %22 = vsyncpa [#allocation4], 0 }
   0x4   :  { %23 = vsyncpa [#allocation13], 0  ;;  %s2311_s25 = smov [#allocation5]   ;;  %s2147_s29 = scalar_lea.hbm %s2694_s4, 64 }
   0x5   :  { %s47_s26 = sshll.u32 %s2311_s25, 4  ;;  %p2148_p0 = scmp.ne.s32.totalorder %s2694_s4, %s2147_s29  ;;  %s48_s26 = int_to_ptr.vmem [resolvable:$true] %s47_s26 }
   0x6   :  { %p2151_p1 = scmp.lt.u32.totalorder %s2147_s29, %s2694_s4 }
   0x8   :  { %p2153_p2 = pnand %p2151_p1, %p2148_p0 }
   0xa   :  { %2156 = shalt.err (!%p2153_p2)
}
   0xb   :  { %s2157_s17 = scalar_lea.vmem %s48_s26, 64  ;;  %p2162_p4 = scmp.lt.s32.totalorder %s48_s26, %s48_s26 }
   0xc   :  { %p2158_p3 = scmp.ne.s32.totalorder %s48_s26, %s2157_s17  ;;  %p2163_p5 = scmp.lt.s32.totalorder %s2157_s17, %s2157_s17 }
   0xe   :  { %p2164_p6 = por %p2163_p5, %p2162_p4 }
  0x10   :  { %p2165_p7 = pnand %p2164_p6, %p2158_p3 }
  0x12   :  { %2168 = shalt.err (!%p2165_p7)
}
  0x13   :  { %s2312_s18 = smov 16   ;;  %s2313_s19 = smov 1  }
  0x14   :  { %53 = dma.hbm_to_vmem [thread:$0]  %s2694_s4, 64, %s48_s26, [#allocation6], %s2312_s18, %s2312_s18, %s2313_s19  }
  0x15   :  { %s2314_s22 = smov [#allocation8]   ;;  %s2315_s24 = smov [#allocation2]  }
  0x16   :  { %s71_s23 = sshll.u32 %s2314_s22, 4  ;;  %s35_s25 = sshll.u32 %s2315_s24, 4  ;;  %s72_s23 = int_to_ptr.vmem [resolvable:$true] %s71_s23  ;;  %s36_s25 = int_to_ptr.vmem [resolvable:$true] %s35_s25 }
  0x17   :  { %s2169_s29 = scalar_lea.hbm %s2696_s6, 2048 }
  0x18   :  { %p2170_p8 = scmp.ne.s32.totalorder %s2696_s6, %s2169_s29  ;;  %p2173_p9 = scmp.lt.u32.totalorder %s2169_s29, %s2696_s6 }
  0x1a   :  { %p2175_p10 = pnand %p2173_p9, %p2170_p8 }
  0x1c   :  { %2178 = shalt.err (!%p2175_p10)
}
  0x1d   :  { %s2179_s4 = scalar_lea.vmem %s72_s23, 2048  ;;  %p2184_p12 = scmp.lt.s32.totalorder %s72_s23, %s72_s23 }
  0x1e   :  { %p2180_p11 = scmp.ne.s32.totalorder %s72_s23, %s2179_s4  ;;  %p2185_p13 = scmp.lt.s32.totalorder %s2179_s4, %s2179_s4 }
  0x20   :  { %p2186_p0 = por %p2185_p13, %p2184_p12 }
  0x22   :  { %p2187_p1 = pnand %p2186_p0, %p2180_p11 }
  0x24   :  { %2190 = shalt.err (!%p2187_p1)
}
  0x25   :  { %s2316_s26 = smov 128   ;;  %s2317_s17 = smov 8  }
  0x26   :  { %77 = dma.hbm_to_vmem [thread:$0]  %s2696_s6, 2048, %s72_s23, [#allocation9], %s2316_s26, %s2316_s26, %s2317_s17  }
  0x27   :  { %s2191_s27 = scalar_lea.hbm %s2693_s3, 2048 }
  0x28   :  { %p2192_p2 = scmp.ne.s32.totalorder %s2693_s3, %s2191_s27  ;;  %p2195_p3 = scmp.lt.u32.totalorder %s2191_s27, %s2693_s3 }
  0x2a   :  { %p2197_p4 = pnand %p2195_p3, %p2192_p2 }
  0x2c   :  { %2200 = shalt.err (!%p2197_p4)
}
  0x2d   :  { %s2201_s15 = scalar_lea.vmem %s36_s25, 2048  ;;  %p2206_p6 = scmp.lt.s32.totalorder %s36_s25, %s36_s25 }
  0x2e   :  { %p2202_p5 = scmp.ne.s32.totalorder %s36_s25, %s2201_s15  ;;  %p2207_p7 = scmp.lt.s32.totalorder %s2201_s15, %s2201_s15 }
  0x30   :  { %p2208_p8 = por %p2207_p7, %p2206_p6 }
  0x32   :  { %p2209_p9 = pnand %p2208_p8, %p2202_p5 }
  0x34   :  { %2212 = shalt.err (!%p2209_p9)
}
  0x35   :  { %41 = dma.hbm_to_vmem [thread:$0]  %s2693_s3, 2048, %s36_s25, [#allocation3], %s2316_s26, %s2316_s26, %s2317_s17  }
  0x36   :  { %s2318_s16 = smov [#allocation7]   ;;  %s2319_s20 = smov [#allocation10]  }
  0x37   :  { %s59_s4 = sshll.u32 %s2318_s16, 4  ;;  %s83_s21 = sshll.u32 %s2319_s20, 4  ;;  %s60_s4 = int_to_ptr.vmem [resolvable:$true] %s59_s4  ;;  %s84_s21 = int_to_ptr.vmem [resolvable:$true] %s83_s21 }
  0x38   :  { %s2213_s27 = scalar_lea.hbm %s2695_s5, 2048 }
  0x39   :  { %p2214_p10 = scmp.ne.s32.totalorder %s2695_s5, %s2213_s27  ;;  %p2217_p11 = scmp.lt.u32.totalorder %s2213_s27, %s2695_s5 }
  0x3b   :  { %p2219_p12 = pnand %p2217_p11, %p2214_p10 }
  0x3d   :  { %2222 = shalt.err (!%p2219_p12)
}
  0x3e   :  { %s2223_s3 = scalar_lea.vmem %s60_s4, 2048  ;;  %p2228_p0 = scmp.lt.s32.totalorder %s60_s4, %s60_s4 }
  0x3f   :  { %p2224_p13 = scmp.ne.s32.totalorder %s60_s4, %s2223_s3  ;;  %p2229_p1 = scmp.lt.s32.totalorder %s2223_s3, %s2223_s3 }
  0x41   :  { %p2230_p2 = por %p2229_p1, %p2228_p0 }
  0x43   :  { %p2231_p3 = pnand %p2230_p2, %p2224_p13 }
  0x45   :  { %2234 = shalt.err (!%p2231_p3)
}
  0x46   :  { %65 = dma.hbm_to_vmem [thread:$0]  %s2695_s5, 2048, %s60_s4, [#allocation6], %s2316_s26, %s2316_s26, %s2317_s17  }
  0x47   :  { %s2235_s16 = scalar_lea.hbm %s2697_s7, 64 }
  0x48   :  { %p2236_p4 = scmp.ne.s32.totalorder %s2697_s7, %s2235_s16  ;;  %p2239_p5 = scmp.lt.u32.totalorder %s2235_s16, %s2697_s7 }
  0x4a   :  { %p2241_p6 = pnand %p2239_p5, %p2236_p4 }
  0x4c   :  { %2244 = shalt.err (!%p2241_p6)
}
  0x4d   :  { %s2245_s28 = scalar_lea.vmem %s84_s21, 64  ;;  %p2250_p8 = scmp.lt.s32.totalorder %s84_s21, %s84_s21 }
  0x4e   :  { %p2246_p7 = scmp.ne.s32.totalorder %s84_s21, %s2245_s28  ;;  %p2251_p9 = scmp.lt.s32.totalorder %s2245_s28, %s2245_s28 }
  0x50   :  { %p2252_p10 = por %p2251_p9, %p2250_p8 }
  0x52   :  { %p2253_p11 = pnand %p2252_p10, %p2246_p7 }
  0x54   :  { %2256 = shalt.err (!%p2253_p11)
}
  0x55   :  { %89 = dma.hbm_to_vmem [thread:$0]  %s2697_s7, 64, %s84_s21, [#allocation9], %s2312_s18, %s2312_s18, %s2313_s19  }
  0x56   :  { %2301 = dma.done.wait [#allocation3], 2048  }
  0x57   :  { %2302 = vsyncadd [#allocation3], 4294965248 }
  0x58   :  { %2303 = dma.done.wait [#allocation6], 2112  }
  0x59   :  { %2304 = vsyncadd [#allocation6], 4294965184 }
  0x5a   :  { %2305 = dma.done.wait [#allocation9], 2112  }
  0x5b   :  { %2306 = vsyncadd [#allocation9], 4294965184  ;;  %v2320_v0 = vmov 0   ;;  %v2321_v1 = vmov 0.0|0.0   ;;  %v113_v2 = vld [vmem:[%s2690_s0] sm:$0xff]  ;;  %v123_v4 = vld [vmem:[%s2691_s1 + $0x8] sm:$0xff]  ;;  %v114_v26 = vlaneseq }
  0x5c   :  { %2110 = vset.pattern.permute.xlu0 %v2320_v0  ;;  %1990 = vmatprep.subr.bf16.mxu0 %v2321_v1  ;;  %v122_v3 = vld [vmem:[%s2691_s1] sm:$0xff]  ;;  %v124_v6 = vld [vmem:[%s2691_s1 + $0x10] sm:$0xff]  ;;  %v125_v7 = vld [vmem:[%s2691_s1 + $0x18] sm:$0xff]  ;;  %vm2322_vm0 = vmmov 0   ;;  %v2323_v8 = vmov 0.0   ;;  %vm212_vm1 = vcmask 261120  }
  0x5d   :  { %2002 = vmatprep.subr.bf16.mxu1 %v2321_v1  ;;  %117 = vperm.xlu0 %2110, %v113_v2   ;;  %v1991_v5 = vpack.c.bf16 %v123_v4, %v122_v3  ;;  %v1994_v9 = vpack.c.bf16 %v125_v7, %v124_v6  ;;  %v126_v10 = vld [vmem:[%s2691_s1 + $0x20] sm:$0xff]  ;;  %v208_v11 = vld [vmem:[#allocation2] sm:$0xff]  ;;  %v209_v12 = vld [vmem:[#allocation2 + $0x8] sm:$0xff]  ;;  %v115_v27 = vand.u32 127, %v114_v26  ;;  %vm130_vm2 = vcmask 523264   ;;  %s2324_s17 = smov 32  }
  0x5e   :  { %1816 = vmatprep.mubr.msk.f32.mxu0 %vm2322_vm0, %v2323_v8  ;;  %1827 = vmatprep.mubr.msk.f32.mxu1 %vm2322_vm0, %v2323_v8  ;;  %v127_v13 = vld [vmem:[%s2691_s1 + $0x28] sm:$0xff]  ;;  %v2003_v14 = vpack.c.bf16 %v209_v12, %v208_v11  ;;  %v210_v15 = vld [vmem:[#allocation2 + $0x10] sm:$0xff]  ;;  %v128_v19 = vld [vmem:[%s2691_s1 + $0x30] sm:$0xff]  ;;  %vm286_vm4 = vcmask 130048   ;;  %s2327_s30 = smov [#allocation12]   ;;  %vm1638_vm5 = vcmask 785408  }
  0x5f   :  { %1992 = vmatpush3.bf16.msra.mxu0 %v1991_v5  ;;  %v211_v16 = vld [vmem:[#allocation2 + $0x18] sm:$0xff]  ;;  %v1997_v18 = vpack.c.bf16 %v127_v13, %v126_v10  ;;  %v129_v20 = vld [vmem:[%s2691_s1 + $0x38] sm:$0xff]  ;;  %v206_v21 = vld [vmem:[%s2692_s2] sm:$0xff]  ;;  %s2325_s1 = smov 64   ;;  %s1657_s7 = sshll.u32 %s2327_s30, 4  ;;  %s1658_s7 = int_to_ptr.vmem [resolvable:$true] %s1657_s7 }
  0x60   :  { %1993 = vmatprep.subr.bf16.mxu0 %v2321_v1  ;;  %2004 = vmatpush3.bf16.msra.mxu1 %v2003_v14  ;;  %v2006_v17 = vpack.c.bf16 %v211_v16, %v210_v15  ;;  %v207_v22 = vld [vmem:[%s2692_s2 + $0x8] sm:$0xff]  ;;  %v2519_v23 = vld [vmem:[%s2700_s10] sm:$0xff]  ;;  %v2000_v25 = vpack.c.bf16 %v129_v20, %v128_v19  ;;  %v541_v28 = vld [vmem:[#allocation2 + $0x40] sm:$0xff]  ;;  %p2262_p13 = scmp.lt.s32.totalorder %s1658_s7, %s1658_s7 }
  0x61   :  { %2005 = vmatprep.subr.bf16.mxu1 %v2321_v1  ;;  %v2009_v24 = vpack.c.bf16 %v207_v22, %v206_v21  ;;  %v542_v29 = vld [vmem:[#allocation2 + $0x48] sm:$0xff]  ;;  %v543_v32 = vld [vmem:[#allocation2 + $0x50] sm:$0xff]  ;;  %v544_v33 = vld [vmem:[#allocation2 + $0x58] sm:$0xff] }
  0x62   :  { %v2021_v31 = vpack.c.bf16 %v542_v29, %v541_v28  ;;  %v2024_v35 = vpack.c.bf16 %v544_v33, %v543_v32  ;;  %v1689_v36 = vld [vmem:[%s2692_s2 + $0x30] sm:$0xff]  ;;  %v1690_v37 = vld [vmem:[%s2692_s2 + $0x38] sm:$0xff]  ;;  %v380_v44 = vld [vmem:[#allocation2 + $0x30] sm:$0xff] }
  0x63   :  { %1995 = vmatpush3.bf16.msra.mxu0 %v1994_v9  ;;  %v2036_v38 = vpack.c.bf16 %v1690_v37, %v1689_v36  ;;  %v378_v41 = vld [vmem:[#allocation2 + $0x20] sm:$0xff]  ;;  %v379_v42 = vld [vmem:[#allocation2 + $0x28] sm:$0xff]  ;;  %v381_v45 = vld [vmem:[#allocation2 + $0x38] sm:$0xff] }
  0x64   :  { %1996 = vmatprep.subr.bf16.mxu0 %v2321_v1  ;;  %2007 = vmatpush3.bf16.msra.mxu1 %v2006_v17  ;;  %v2012_v43 = vpack.c.bf16 %v379_v42, %v378_v41  ;;  %v2015_v48 = vpack.c.bf16 %v381_v45, %v380_v44  ;;  %v1678_v49 = vld [vmem:[%s2692_s2 + $0x10] sm:$0xff]  ;;  %v1679_v50 = vld [vmem:[%s2692_s2 + $0x18] sm:$0xff]  ;;  %v1684_v52 = vld [vmem:[%s2692_s2 + $0x20] sm:$0xff] }
  0x65   :  { %2008 = vmatprep.subr.bf16.mxu1 %v2321_v1  ;;  %v2018_v51 = vpack.c.bf16 %v1679_v50, %v1678_v49  ;;  %v1685_v53 = vld [vmem:[%s2692_s2 + $0x28] sm:$0xff]  ;;  %v699_v57 = vld [vmem:[#allocation2 + $0x60] sm:$0xff]  ;;  %v700_v58 = vld [vmem:[#allocation2 + $0x68] sm:$0xff] }
  0x66   :  { %v2027_v56 = vpack.c.bf16 %v1685_v53, %v1684_v52  ;;  %v2030_v59 = vpack.c.bf16 %v700_v58, %v699_v57  ;;  %v701_v60 = vld [vmem:[#allocation2 + $0x70] sm:$0xff]  ;;  %v702_v61 = vld [vmem:[#allocation2 + $0x78] sm:$0xff]  ;;  %v871_v63 = vld [vmem:[#allocation8] sm:$0xff] }
  0x67   :  { %1998 = vmatpush3.bf16.msra.mxu0 %v1997_v18  ;;  %1828 = vmatmul.mubr.msk.f32.vlgmr.msra.gmra.mrb[0].mxu1 %vm212_vm1, %v2519_v23  ;;  %v2033_v62 = vpack.c.bf16 %v702_v61, %v701_v60  ;;  %v872_v0 = vld [vmem:[#allocation8 + $0x8] sm:$0xff]  ;;  %v867_v2 = vld [vmem:[#allocation7] sm:$0xff]  ;;  %v873_v5 = vld [vmem:[#allocation8 + $0x10] sm:$0xff] }
  0x68   :  { %1999 = vmatprep.subr.bf16.mxu0 %v2321_v1  ;;  %2010 = vmatpush3.bf16.msra.mxu1 %v2009_v24  ;;  %v2039_v3 = vpack.c.bf16 %v872_v0, %v871_v63  ;;  %v868_v4 = vld [vmem:[#allocation7 + $0x8] sm:$0xff]  ;;  %v874_v6 = vld [vmem:[#allocation8 + $0x18] sm:$0xff]  ;;  %v869_v9 = vld [vmem:[#allocation7 + $0x10] sm:$0xff] }
  0x69   :  { %1834 = vmatprep.mubr.msk.f32.mxu1 %vm2322_vm0, %v2323_v8  ;;  %2011 = vmatprep.subr.bf16.mxu1 %v2321_v1  ;;  %v2045_v7 = vpack.c.bf16 %v868_v4, %v867_v2  ;;  %v870_v10 = vld [vmem:[#allocation7 + $0x18] sm:$0xff]  ;;  %v2042_v11 = vpack.c.bf16 %v874_v6, %v873_v5  ;;  %v1041_v14 = vld [vmem:[#allocation8 + $0x20] sm:$0xff]  ;;  %v1042_v15 = vld [vmem:[#allocation8 + $0x28] sm:$0xff] }
  0x6a   :  { %v2048_v12 = vpack.c.bf16 %v870_v10, %v869_v9  ;;  %v1695_v13 = vld [vmem:[%s2700_s10 + $0x8] sm:$0xff]  ;;  %v2051_v16 = vpack.c.bf16 %v1042_v15, %v1041_v14  ;;  %v1206_v20 = vld [vmem:[#allocation8 + $0x40] sm:$0xff]  ;;  %v1207_v21 = vld [vmem:[#allocation8 + $0x48] sm:$0xff] }
  0x6b   :  { %2001 = vmatpush3.bf16.msra.mxu0 %v2000_v25  ;;  %v1043_v17 = vld [vmem:[#allocation8 + $0x30] sm:$0xff]  ;;  %v1044_v18 = vld [vmem:[#allocation8 + $0x38] sm:$0xff]  ;;  %v2063_v22 = vpack.c.bf16 %v1207_v21, %v1206_v20  ;;  %v1366_v26 = vld [vmem:[#allocation8 + $0x60] sm:$0xff] }
  0x6c   :  { %2020 = vmatprep.subr.bf16.mxu0 %v2321_v1  ;;  %v2054_v19 = vpack.c.bf16 %v1044_v18, %v1043_v17  ;;  %v1209_v24 = vld [vmem:[#allocation8 + $0x58] sm:$0xff]  ;;  %v1368_v29 = vld [vmem:[#allocation8 + $0x70] sm:$0xff]  ;;  %v1036_v10 = vld [vmem:[#allocation7 + $0x20] sm:$0xff] }
  0x6d   :  { %v1676_v33 = vld [vmem:[#allocation5] ss:$0 sm:$0xff]  ;;  %v1682_v44 = vld [vmem:[#allocation5 + $0x1] ss:$0 sm:$0xff]  ;;  %v1688_v49 = vld [vmem:[#allocation5 + $0x2] ss:$0 sm:$0xff] }
  0x6e   :  { %v1693_v57 = vld [vmem:[#allocation5 + $0x3] ss:$0 sm:$0xff]  ;;  %v1202_v20 = vld [vmem:[#allocation7 + $0x48] sm:$0xff] }
  0x6f   :  { %v1039_v17 = vld [vmem:[#allocation7 + $0x38] sm:$0xff] }
  0xdc   :  { %v118_v30 = vpop.permute.xlu0 %117 }
  0xdd   :  { %vm119_vm3 = vcmp.eq.s32.totalorder %v115_v27, %v118_v30  ;;  %v1367_v27 = vld [vmem:[#allocation8 + $0x68] sm:$0xff]  ;;  %v1369_v30 = vld [vmem:[#allocation8 + $0x78] sm:$0xff] }
  0xde   :  { %v1672_v34 = vsel %vm119_vm3, 1.0, %v2323_v8  ;;  %v2075_v28 = vpack.c.bf16 %v1367_v27, %v1366_v26  ;;  %v1362_v26 = vld [vmem:[#allocation7 + $0x68] sm:$0xff] }
  0xdf   :  { %1817 = vmatmul.mubr.msk.f32.vlgmr.msra.gmra.mrb[0].mxu0 %vm130_vm2, %v1672_v34 }
  0xe0   :  { %2022 = vmatpush3.bf16.msra.mxu0 %v2021_v31  ;;  %1863 = vmatprep.mubr.msk.f32.mxu0 %vm2322_vm0, %v2323_v8  ;;  %v2078_v31 = vpack.c.bf16 %v1369_v30, %v1368_v29  ;;  %v1364_v29 = vld [vmem:[#allocation7 + $0x78] sm:$0xff] }
  0xe1   :  { %2023 = vmatprep.subr.bf16.mxu0 %v2321_v1 }
  0xe4   :  { %2025 = vmatpush3.bf16.msra.mxu0 %v2024_v35 }
  0xe5   :  { %2035 = vmatprep.subr.bf16.mxu0 %v2321_v1 }
  0xe7   :  { %1864 = vmatmul.mubr.msk.f32.vlgmr.msra.gmra.mrb[2].mxu0 %vm212_vm1, %v2519_v23 }
  0xe8   :  { %2037 = vmatpush3.bf16.msra.mxu0 %v2036_v38  ;;  %1888 = vmatprep.mubr.msk.f32.mxu0 %vm2322_vm0, %v2323_v8 }
  0xe9   :  { %2038 = vmatprep.subr.bf16.mxu0 %v2321_v1 }
 0x13a   :  { %v2546_v39 = vpop.f32.mrb[0].mxu1 }
 0x13b   :  { %v1829_v40 = vpop.f32.mrb[1].mxu1 }
 0x1b2   :  { %v200_v46 = vpop.f32.mrb[0].mxu0 }
 0x1b3   :  { %v1818_v47 = vpop.f32.mrb[1].mxu0  ;;  %1835 = vmatmul.mubr.msk.f32.vlgmr.msra.gmra.mrb[2].mxu1 %vm286_vm4, %v200_v46  ;;  %1889 = vmatmul.mubr.msk.f32.vlgmr.msra.gmra.mrb[4].mxu0 %vm286_vm4, %v200_v46 }
 0x1b4   :  { %2013 = vmatpush3.bf16.msra.mxu1 %v2012_v43  ;;  %1845 = vmatprep.mubr.msk.f32.mxu1 %vm2322_vm0, %v2323_v8 }
 0x1b5   :  { %2014 = vmatprep.subr.bf16.mxu1 %v2321_v1  ;;  %1899 = vmatprep.mubr.msk.f32.mxu0 %vm2322_vm0, %v2323_v8 }
 0x1b6   :  { %2040 = vmatpush3.bf16.msra.mxu0 %v2039_v3 }
 0x1b7   :  { %2041 = vmatprep.subr.bf16.mxu0 %v2321_v1 }
 0x1b8   :  { %2016 = vmatpush3.bf16.msra.mxu1 %v2015_v48 }
 0x1b9   :  { %2017 = vmatprep.subr.bf16.mxu1 %v2321_v1 }
 0x1ba   :  { %v2568_v54 = vpop.f32.mrb[2].mxu0  ;;  %2043 = vmatpush3.bf16.msra.mxu0 %v2042_v11  ;;  %v1037_v11 = vld [vmem:[#allocation7 + $0x28] sm:$0xff] }
 0x1bb   :  { %1846 = vmatmul.mubr.msk.f32.vlgmr.msra.gmra.mrb[4].mxu1 %vm212_vm1, %v2519_v23  ;;  %v1865_v55 = vpop.f32.mrb[3].mxu0  ;;  %2050 = vmatprep.subr.bf16.mxu0 %v2321_v1  ;;  %v2057_v14 = vpack.c.bf16 %v1037_v11, %v1036_v10 }
 0x1bc   :  { %2019 = vmatpush3.bf16.msra.mxu1 %v2018_v51  ;;  %1852 = vmatprep.mubr.msk.f32.mxu1 %vm2322_vm0, %v2323_v8 }
 0x1bd   :  { %2026 = vmatprep.subr.bf16.mxu1 %v2321_v1  ;;  %1900 = vmatmul.mubr.msk.f32.vlgmr.msra.gmra.mrb[6].mxu0 %vm212_vm1, %v1695_v13 }
 0x1be   :  { %1921 = vmatprep.mubr.msk.f32.mxu0 %vm2322_vm0, %v2323_v8  ;;  %2052 = vmatpush3.bf16.msra.mxu0 %v2051_v16  ;;  %v1038_v16 = vld [vmem:[#allocation7 + $0x30] sm:$0xff] }
 0x1bf   :  { %1853 = vmatmul.mubr.msk.f32.vlgmr.msra.gmra.mrb[6].mxu1 %vm286_vm4, %v200_v46  ;;  %2053 = vmatprep.subr.bf16.mxu0 %v2321_v1  ;;  %v2060_v18 = vpack.c.bf16 %v1039_v17, %v1038_v16 }
 0x1c0   :  { %2028 = vmatpush3.bf16.msra.mxu1 %v2027_v56  ;;  %1870 = vmatprep.mubr.msk.f32.mxu1 %vm2322_vm0, %v2323_v8 }
 0x1c1   :  { %2029 = vmatprep.subr.bf16.mxu1 %v2321_v1 }
 0x1c2   :  { %2055 = vmatpush3.bf16.msra.mxu0 %v2054_v19  ;;  %v1201_v19 = vld [vmem:[#allocation7 + $0x40] sm:$0xff] }
 0x1c3   :  { %1871 = vmatmul.mubr.msk.f32.vlgmr.msra.gmra.mrb[8].mxu1 %vm286_vm4, %v200_v46  ;;  %2062 = vmatprep.subr.bf16.mxu0 %v2321_v1  ;;  %v2069_v21 = vpack.c.bf16 %v1202_v20, %v1201_v19 }
 0x1c4   :  { %2031 = vmatpush3.bf16.msra.mxu1 %v2030_v59  ;;  %1881 = vmatprep.mubr.msk.f32.mxu1 %vm2322_vm0, %v2323_v8 }
 0x1c5   :  { %2032 = vmatprep.subr.bf16.mxu1 %v2321_v1  ;;  %1922 = vmatmul.mubr.msk.f32.vlgmr.msra.gmra.mrb[8].mxu0 %vm212_vm1, %v1695_v13 }
 0x1c6   :  { %2064 = vmatpush3.bf16.msra.mxu0 %v2063_v22  ;;  %1943 = vmatprep.mubr.msk.f32.mxu0 %vm2322_vm0, %v2323_v8  ;;  %v1203_v22 = vld [vmem:[#allocation7 + $0x50] sm:$0xff] }
 0x1c7   :  { %2065 = vmatprep.subr.bf16.mxu0 %v2321_v1 }
 0x1c8   :  { %2034 = vmatpush3.bf16.msra.mxu1 %v2033_v62 }
 0x1c9   :  { %2044 = vmatprep.subr.bf16.mxu1 %v2321_v1 }
 0x1cb   :  { %1882 = vmatmul.mubr.msk.f32.vlgmr.msra.gmra.mrb[10].mxu1 %vm212_vm1, %v2519_v23  ;;  %v1208_v23 = vld [vmem:[#allocation8 + $0x50] sm:$0xff] }
 0x1cc   :  { %1910 = vmatprep.mubr.msk.f32.mxu1 %vm2322_vm0, %v2323_v8  ;;  %2046 = vmatpush3.bf16.msra.mxu1 %v2045_v7  ;;  %v2066_v25 = vpack.c.bf16 %v1209_v24, %v1208_v23  ;;  %v1204_v23 = vld [vmem:[#allocation7 + $0x58] sm:$0xff] }
 0x1cd   :  { %2047 = vmatprep.subr.bf16.mxu1 %v2321_v1  ;;  %v2072_v24 = vpack.c.bf16 %v1204_v23, %v1203_v22  ;;  %v1712_v22 = vld [vmem:[%s2699_s9] ss:$0 sm:$0xff]  ;;  %s2257_s9 = scalar_lea.vmem %s1658_s7, 128 }
 0x1ce   :  { %2067 = vmatpush3.bf16.msra.mxu0 %v2066_v25  ;;  %v1361_v25 = vld [vmem:[#allocation7 + $0x60] sm:$0xff]  ;;  %p2258_p12 = scmp.ne.s32.totalorder %s1658_s7, %s2257_s9  ;;  %p2263_p0 = scmp.lt.s32.totalorder %s2257_s9, %s2257_s9 }
 0x1cf   :  { %2074 = vmatprep.subr.bf16.mxu0 %v2321_v1  ;;  %v2081_v27 = vpack.c.bf16 %v1362_v26, %v1361_v25 }
 0x1d0   :  { %2049 = vmatpush3.bf16.msra.mxu1 %v2048_v12  ;;  %p2264_p1 = por %p2263_p0, %p2262_p13 }
 0x1d1   :  { %2056 = vmatprep.subr.bf16.mxu1 %v2321_v1  ;;  %1944 = vmatmul.mubr.msk.f32.vlgmr.msra.gmra.mrb[10].mxu0 %vm212_vm1, %v1695_v13 }
 0x1d2   :  { %2076 = vmatpush3.bf16.msra.mxu0 %v2075_v28  ;;  %1965 = vmatprep.mubr.msk.f32.mxu0 %vm2322_vm0, %v2323_v8  ;;  %v1363_v28 = vld [vmem:[#allocation7 + $0x70] sm:$0xff]  ;;  %p2265_p2 = pnand %p2264_p1, %p2258_p12 }
 0x1d3   :  { %2077 = vmatprep.subr.bf16.mxu0 %v2321_v1  ;;  %v2084_v30 = vpack.c.bf16 %v1364_v29, %v1363_v28 }
 0x1d6   :  { %2079 = vmatpush3.bf16.msra.mxu0 %v2078_v31 }
 0x1d7   :  { %2086 = vmatprep.subr.bf16.mxu0 %v2321_v1 }
 0x1d9   :  { %1966 = vmatmul.mubr.msk.f32.vlgmr.msra.gmra.mrb[12].mxu0 %vm212_vm1, %v1695_v13 }
 0x1da   :  { %1987 = vmatprep.mubr.msk.f32.mxu0 %vm2322_vm0, %v2323_v8 }
 0x286   :  { %v356_v32 = vpop.f32.mrb[2].mxu1  ;;  %v839_v34 = vpop.f32.mrb[4].mxu0 }
 0x287   :  { %v357_v35 = vadd.f32 %v356_v32, %v2546_v39  ;;  %v1836_v36 = vpop.f32.mrb[3].mxu1  ;;  %v1890_v37 = vpop.f32.mrb[5].mxu0 }
 0x289   :  { %v367_v38 = vadd.f32 %v1676_v33, %v357_v35 }
 0x28b   :  { %v1677_v40 = vmul.f32 -1.442695, %v367_v38 }
 0x28d   :  { %2111 = vpow2.f32 %v1677_v40  ;;  %v1530_v40 = vld [vmem:[%s2698_s8] sm:$0xff] }
 0x28e   :  { %v448_v41 = vpop.f32.mrb[4].mxu1 }
 0x28f   :  { %v1847_v42 = vpop.f32.mrb[5].mxu1 }
 0x290   :  { %v944_v31 = vpop.f32.mrb[6].mxu0 }
 0x291   :  { %v1901_v32 = vpop.f32.mrb[7].mxu0 }
 0x292   :  { %v518_v43 = vpop.f32.mrb[6].mxu1 }
 0x293   :  { %v519_v45 = vadd.f32 %v518_v43, %v448_v41  ;;  %v1854_v46 = vpop.f32.mrb[7].mxu1  ;;  %v1532_v41 = vld [vmem:[%s2698_s8 + $0x10] sm:$0xff]  ;;  %v1533_v43 = vld [vmem:[%s2698_s8 + $0x18] sm:$0xff] }
 0x294   :  { %v1699_v46 = vld [vmem:[#allocation10] ss:$0 sm:$0xff] }
 0x295   :  { %v530_v47 = vadd.f32 %v1682_v44, %v519_v45  ;;  %v2090_v44 = vpack.c.bf16 %v1533_v43, %v1532_v41 }
 0x296   :  { %v681_v48 = vpop.f32.mrb[8].mxu1 }
 0x297   :  { %v2112_v50 = vpop.eup %2111  ;;  %v1683_v51 = vmul.f32 -1.442695, %v530_v47  ;;  %v682_v52 = vadd.f32 %v681_v48, %v2568_v54  ;;  %v1872_v53 = vpop.f32.mrb[9].mxu1  ;;  %v205_v54 = vld [vmem:[%s2701_s11] sm:$0xff] }
 0x298   :  { %v371_v39 = vadd.f32 1.0, %v2112_v50  ;;  %v1111_v33 = vpop.f32.mrb[8].mxu0 }
 0x299   :  { %2113 = vpow2.f32 %v1683_v51  ;;  %v693_v55 = vadd.f32 %v1688_v49, %v682_v52  ;;  %v1703_v52 = vld [vmem:[#allocation10 + $0x1] ss:$0 sm:$0xff] }
 0x29a   :  { %2115 = vrcp.f32 %v371_v39 }
 0x29b   :  { %2117 = vtanh.f32 %v693_v55 }
 0x29e   :  { %v769_v56 = vpop.f32.mrb[10].mxu1 }
 0x29f   :  { %v840_v58 = vadd.f32 %v839_v34, %v769_v56  ;;  %v1883_v59 = vpop.f32.mrb[11].mxu1  ;;  %v1923_v34 = vpop.f32.mrb[9].mxu0 }
 0x2a1   :  { %v851_v60 = vadd.f32 %v1693_v57, %v840_v58  ;;  %v1707_v58 = vld [vmem:[#allocation10 + $0x2] ss:$0 sm:$0xff] }
 0x2a3   :  { %v2114_v61 = vpop.eup %2113  ;;  %v1694_v62 = vmul.f32 -1.442695, %v851_v60 }
 0x2a4   :  { %v2116_v63 = vpop.eup %2115  ;;  %v534_v0 = vadd.f32 1.0, %v2114_v61  ;;  %v1276_v35 = vpop.f32.mrb[10].mxu0 }
 0x2a5   :  { %v2118_v2 = vpop.eup %2117  ;;  %2119 = vpow2.f32 %v1694_v62  ;;  %v1945_v36 = vpop.f32.mrb[11].mxu0 }
 0x2a6   :  { %2121 = vrcp.f32 %v534_v0  ;;  %v859_v3 = vmul.f32 %v2118_v2, %v2116_v63  ;;  %v1710_v0 = vld [vmem:[#allocation10 + $0x3] ss:$0 sm:$0xff] }
 0x2ac   :  { %v1436_v37 = vpop.f32.mrb[12].mxu0 }
 0x2ad   :  { %v1967_v38 = vpop.f32.mrb[13].mxu0 }
 0x2af   :  { %v2120_v4 = vpop.eup %2119 }
 0x2b0   :  { %v2122_v5 = vpop.eup %2121  ;;  %v855_v6 = vadd.f32 1.0, %v2120_v4 }
 0x2b1   :  { %v858_v7 = vmul.f32 %v2122_v5, %v205_v54 }
 0x2b2   :  { %2123 = vrcp.f32 %v855_v6 }
 0x2b3   :  { %v2618_v9 = vadd.f32 %v859_v3, %v858_v7 }
 0x2b5   :  { %2125 = vtanh.f32 %v2618_v9 }
 0x2bc   :  { %v2124_v12 = vpop.eup %2123 }
 0x2bf   :  { %v2126_v13 = vpop.eup %2125 }
 0x2c0   :  { %v2621_v15 = vmul.f32 %v2126_v13, %v2124_v12  ;;  %v1696_v12 = vld [vmem:[%s2701_s11 + $0x8] sm:$0xff]  ;;  %s2326_s11 = smov 96  }
 0x2c2   :  { %1911 = vmatmul.mubr.msk.f32.vlgmr.msra.gmra.mrb[12].mxu1 %vm212_vm1, %v2621_v15 }
 0x2c3   :  { %2058 = vmatpush3.bf16.msra.mxu1 %v2057_v14  ;;  %1932 = vmatprep.mubr.msk.f32.mxu1 %vm2322_vm0, %v2323_v8 }
 0x2c4   :  { %2059 = vmatprep.subr.bf16.mxu1 %v2321_v1 }
 0x2c7   :  { %2061 = vmatpush3.bf16.msra.mxu1 %v2060_v18 }
 0x2c8   :  { %2068 = vmatprep.subr.bf16.mxu1 %v2321_v1 }
 0x2ca   :  { %1933 = vmatmul.mubr.msk.f32.vlgmr.msra.gmra.mrb[14].mxu1 %vm212_vm1, %v2621_v15 }
 0x2cb   :  { %2070 = vmatpush3.bf16.msra.mxu1 %v2069_v21  ;;  %1954 = vmatprep.mubr.msk.f32.mxu1 %vm2322_vm0, %v2323_v8 }
 0x2cc   :  { %2071 = vmatprep.subr.bf16.mxu1 %v2321_v1 }
 0x2cf   :  { %2073 = vmatpush3.bf16.msra.mxu1 %v2072_v24 }
 0x2d0   :  { %2080 = vmatprep.subr.bf16.mxu1 %v2321_v1 }
 0x2d2   :  { %1955 = vmatmul.mubr.msk.f32.vlgmr.msra.gmra.mrb[16].mxu1 %vm212_vm1, %v2621_v15 }
 0x2d3   :  { %2082 = vmatpush3.bf16.msra.mxu1 %v2081_v27  ;;  %1976 = vmatprep.mubr.msk.f32.mxu1 %vm2322_vm0, %v2323_v8  ;;  %v1531_v8 = vld [vmem:[%s2698_s8 + $0x8] sm:$0xff] }
 0x2d4   :  { %2083 = vmatprep.subr.bf16.mxu1 %v2321_v1  ;;  %v2087_v42 = vpack.c.bf16 %v1531_v8, %v1530_v40 }
 0x2d6   :  { %2088 = vmatpush3.bf16.msra.mxu0 %v2087_v42 }
 0x2d7   :  { %2085 = vmatpush3.bf16.msra.mxu1 %v2084_v30  ;;  %2089 = vmatprep.subr.bf16.mxu0 %v2321_v1 }
 0x2da   :  { %1977 = vmatmul.mubr.msk.f32.vlgmr.msra.gmra.mrb[18].mxu1 %vm212_vm1, %v2621_v15  ;;  %2091 = vmatpush3.bf16.msra.mxu0 %v2090_v44 }
 0x395   :  { %v1017_v45 = vpop.f32.mrb[12].mxu1 }
 0x396   :  { %v1018_v47 = vadd.f32 %v1017_v45, %v944_v31  ;;  %v1912_v48 = vpop.f32.mrb[13].mxu1 }
 0x398   :  { %v1028_v49 = vadd.f32 %v1699_v46, %v1018_v47 }
 0x39a   :  { %v1700_v50 = vmul.f32 -1.442695, %v1028_v49 }
 0x39c   :  { %2127 = vpow2.f32 %v1700_v50 }
 0x39d   :  { %v1181_v51 = vpop.f32.mrb[14].mxu1 }
 0x39e   :  { %v1182_v53 = vadd.f32 %v1181_v51, %v1111_v33  ;;  %v1934_v39 = vpop.f32.mrb[15].mxu1 }
 0x3a0   :  { %v1193_v55 = vadd.f32 %v1703_v52, %v1182_v53 }
 0x3a2   :  { %v1704_v56 = vmul.f32 -1.442695, %v1193_v55 }
 0x3a4   :  { %2129 = vpow2.f32 %v1704_v56 }
 0x3a5   :  { %v1346_v57 = vpop.f32.mrb[16].mxu1 }
 0x3a6   :  { %v2128_v59 = vpop.eup %2127  ;;  %v1347_v60 = vadd.f32 %v1346_v57, %v1276_v35  ;;  %v1956_v1 = vpop.f32.mrb[17].mxu1 }
 0x3a7   :  { %v1032_v61 = vadd.f32 1.0, %v2128_v59 }
 0x3a8   :  { %v1358_v62 = vadd.f32 %v1707_v58, %v1347_v60 }
 0x3a9   :  { %2131 = vrcp.f32 %v1032_v61 }
 0x3aa   :  { %2133 = vtanh.f32 %v1358_v62 }
 0x3ad   :  { %v1506_v63 = vpop.f32.mrb[18].mxu1 }
 0x3ae   :  { %v2130_v2 = vpop.eup %2129  ;;  %v1507_v3 = vadd.f32 %v1506_v63, %v1436_v37  ;;  %v1978_v54 = vpop.f32.mrb[19].mxu1 }
 0x3af   :  { %v1197_v4 = vadd.f32 1.0, %v2130_v2 }
 0x3b0   :  { %v1518_v5 = vadd.f32 %v1710_v0, %v1507_v3 }
 0x3b1   :  { %2135 = vrcp.f32 %v1197_v4 }
 0x3b2   :  { %v1711_v6 = vmul.f32 -1.442695, %v1518_v5 }
 0x3b3   :  { %v2132_v7 = vpop.eup %2131 }
 0x3b4   :  { %v2134_v10 = vpop.eup %2133  ;;  %2137 = vpow2.f32 %v1711_v6 }
 0x3b5   :  { %v1526_v11 = vmul.f32 %v2134_v10, %v2132_v7 }
 0x3bb   :  { %v2136_v13 = vpop.eup %2135 }
 0x3bc   :  { %v1525_v14 = vmul.f32 %v2136_v13, %v1696_v12 }
 0x3be   :  { %v2138_v16 = vpop.eup %2137  ;;  %v1527_v17 = vadd.f32 %v1526_v11, %v1525_v14 }
 0x3bf   :  { %v1522_v18 = vadd.f32 1.0, %v2138_v16 }
 0x3c0   :  { %2139 = vtanh.f32 %v1527_v17 }
 0x3c1   :  { %2141 = vrcp.f32 %v1522_v18 }
 0x3ca   :  { %v2140_v19 = vpop.eup %2139 }
 0x3cb   :  { %v2142_v20 = vpop.eup %2141 }
 0x3cc   :  { %v1529_v21 = vmul.f32 %v2142_v20, %v2140_v19 }
 0x3ce   :  { %1625 = vrot.lane.b32.xlu1 %v1529_v21, %s2324_s17  ;;  %1988 = vmatmul.mubr.msk.f32.vlgmr.msra.gmra.mrb[14].mxu0 %vm212_vm1, %v1529_v21 }
 0x3d2   :  { %1629 = vrot.lane.b32.xlu1 %v2618_v9, %s2325_s1 }
 0x440   :  { %v1626_v30 = vpop.permute.xlu1 %1625 }
 0x441   :  { %v1636_v9 = vsel %vm212_vm1, %v2621_v15, %v1626_v30 }
 0x444   :  { %v1630_v31 = vpop.permute.xlu1 %1629 }
 0x445   :  { %v1637_v33 = vsel %vm130_vm2, %v1636_v9, %v1630_v31 }
 0x4a1   :  { %v1610_v23 = vpop.f32.mrb[14].mxu0 }
 0x4a2   :  { %v1611_v24 = vadd.f32 %v1712_v22, %v1610_v23  ;;  %v1989_v25 = vpop.f32.mrb[15].mxu0 }
 0x4a4   :  { %1614 = vmax.xlane.f32.xlu0 %v1611_v24 }
 0x531   :  { %v1615_v26 = vpop.xlane.xlu0 %1614 }
 0x532   :  { %v1616_v27 = vsub.f32 %v1611_v24, %v1615_v26 }
 0x534   :  { %v1617_v28 = vmul.f32 1.442695, %v1616_v27 }
 0x536   :  { %2143 = vpow2.f32 %v1617_v28 }
 0x540   :  { %v2144_v29 = vpop.eup %2143 }
 0x541   :  { %1619 = vadd.xlane.f32.xlu1 %v2144_v29 }
 0x552   :  { %1633 = vrot.lane.b32.xlu1 %v1527_v17, %s2326_s11 }
 0x5ce   :  { %v1620_v32 = vpop.xlane.xlu1 %1619 }
 0x5cf   :  { %2145 = vlog2.f32 %v1620_v32 }
 0x5d2   :  { %v1634_v34 = vpop.permute.xlu1 %1633 }
 0x5d3   :  { %v1639_v35 = vsel %vm1638_vm5, %v1637_v33, %v1634_v34 }
 0x5d4   :  { %1640 = vst [vmem:[#allocation12] sm:$0xff] %v1639_v35 }
 0x5d5   :  { %2268 = shalt.err (!%p2265_p2)
}
 0x5d6   :  { %s2269_s21 = scalar_lea.hbm %s2703_s13, 128 }
 0x5d7   :  { %p2270_p3 = scmp.ne.s32.totalorder %s2703_s13, %s2269_s21  ;;  %p2273_p4 = scmp.lt.u32.totalorder %s2269_s21, %s2703_s13 }
 0x5d9   :  { %p2275_p5 = pnand %p2273_p4, %p2270_p3 }
 0x5db   :  { %2278 = shalt.err (!%p2275_p5)
}
 0x5dc   :  { %1660 = dma.vmem_to_hbm [thread:$0]  %s1658_s7, 128, %s2703_s13, [#allocation13]   ;;  %v2146_v15 = vpop.eup %2145 }
 0x5dd   :  { %s2328_s10 = smov [#allocation11]   ;;  %v1622_v36 = vmul.f32 0.6931472, %v2146_v15 }
 0x5de   :  { %s1647_s6 = sshll.u32 %s2328_s10, 4  ;;  %s1648_s6 = int_to_ptr.vmem [resolvable:$true] %s1647_s6 }
 0x5df   :  { %v1623_v37 = vsub.f32 %v1616_v27, %v1622_v36  ;;  %s2279_s23 = scalar_lea.vmem %s1648_s6, 128  ;;  %p2284_p7 = scmp.lt.s32.totalorder %s1648_s6, %s1648_s6 }
 0x5e0   :  { %p2280_p6 = scmp.ne.s32.totalorder %s1648_s6, %s2279_s23  ;;  %p2285_p8 = scmp.lt.s32.totalorder %s2279_s23, %s2279_s23 }
 0x5e1   :  { %1624 = vst [vmem:[#allocation11] sm:$0xff] %v1623_v37 }
 0x5e2   :  { %p2286_p9 = por %p2285_p8, %p2284_p7 }
 0x5e4   :  { %p2287_p10 = pnand %p2286_p9, %p2280_p6 }
 0x5e6   :  { %2290 = shalt.err (!%p2287_p10)
}
 0x5e7   :  { %s2291_s22 = scalar_lea.hbm %s2702_s12, 128 }
 0x5e8   :  { %p2292_p11 = scmp.ne.s32.totalorder %s2702_s12, %s2291_s22  ;;  %p2295_p12 = scmp.lt.u32.totalorder %s2291_s22, %s2702_s12 }
 0x5ea   :  { %p2297_p13 = pnand %p2295_p12, %p2292_p11 }
 0x5ec   :  { %2300 = shalt.err (!%p2297_p13)
}
 0x5ed   :  { %1650 = dma.vmem_to_hbm [thread:$0]  %s1648_s6, 128, %s2702_s12, [#allocation4]  }
 0x5ee   :  { %2307 = dma.done.wait [#allocation4], 128  }
 0x5ef   :  { %2308 = vsyncadd [#allocation4], 4294967168 }
 0x5f0   :  { %2309 = dma.done.wait [#allocation13], 128  }
 0x5f1   :  { %2310 = vsyncadd [#allocation13], 4294967168 }
 0x5f2   :  { %1667 = vsyncpa [#allocation3], 1 }
 0x5f3   :  { %1668 = vsyncpa [#allocation6], 1 }
 0x5f4   :  { %1669 = vsyncpa [#allocation9], 1 }
 0x5f5   :  { %1670 = vsyncpa [#allocation4], 1 }
 0x5f6   :  { %1671 = vsyncpa [#allocation13], 1 }

</bundles_post_ra>
